<compile_context>
chip_gen: v7x
topology: tpu7x:2x2x1
jax: 0.10.0
libtpu: 0.0.40
codegen_flags: <defaults>
</compile_context>

<pallas_src>
import jax
import jax.numpy as jnp
from jax.experimental import pallas as pl
from jax.experimental.pallas import tpu as pltpu


def _round_up(x, m):
    return (x + m - 1) // m * m


# ----------------------------- Pallas kernel --------------------------------
def _critic_kernel(sa_ref,
                   w1_ref, b1_ref,
                   w_s2_ref, b_s2_ref,
                   w2a_ref, w2b_ref, b2_ref,
                   w3_ref, b3_ref,
                   out_ref):
    f32 = jnp.float32
    sa = sa_ref[...]                                    # (TB, state_dim+action_dim)

    # Fused first layer: W1 is block-diagonal [w_s1 | 0 ; 0 | w_a1], so
    #   h[:, :256]  == relu(fcs1(state))   (exact: zero rows add 0.0)
    #   h[:, 256:]  == relu(fca1(action))
    h = jnp.dot(sa, w1_ref[...], preferred_element_type=f32)     # (TB, 384)  MXU, K=4
    h = jnp.maximum(h + b1_ref[...], 0.0)
    s1 = h[:, :256]                                     # 128-aligned lane slice
    a1 = h[:, 256:]                                     # 128-aligned lane slice

    # s2 = relu(fcs2(s1))                                (TB, 128)  MXU, K=256
    s2 = jnp.dot(s1, w_s2_ref[...], preferred_element_type=f32)
    s2 = jnp.maximum(s2 + b_s2_ref[...], 0.0)

    # x = relu(fc2(cat(s2, a1))) == relu(s2 @ W2a + a1 @ W2b + b2)
    # Two K=128 dots accumulated directly -> no concat scratch round trip.
    x = jnp.dot(s2, w2a_ref[...], preferred_element_type=f32)
    x = x + jnp.dot(a1, w2b_ref[...], preferred_element_type=f32)
    x = jnp.maximum(x + b2_ref[...], 0.0)               # (TB, 128)

    # q = fc3(x): N=1 -> VPU multiply + lane reduce (XLU).  Store the real
    # (TB, 1) column; output HBM writeback is 4*TB bytes per tile.
    q = jnp.sum(x * w3_ref[...], axis=-1, keepdims=True) + b3_ref[...]
    out_ref[...] = q.astype(out_ref.dtype)


# ------------------------------ host wrapper ---------------------------------
def critic_forward(state, action, kernel_params, tile_b=512):
    """state: (B, state_dim) f32, action: (B, action_dim) f32 -> (B, 1) f32.

    tile_b: rows per grid step.  Default 512 keeps >=2 grid steps for typical
    batches so v7x's two TensorCores both get work; on single-TC v5e/v6e a
    larger tile (1024-2048) amortizes per-step overhead better.
    """
    B, state_dim = state.shape
    action_dim = action.shape[1]
    (w1, b1, w_s2, b_s2, w2a, w2b, b2, w3_row, b3) = kernel_params
    in_dim = state_dim + action_dim

    # Merge state/action into one lane-padded activation input (layout only).
    sa = jnp.concatenate([state, action], axis=1)       # (B, in_dim)

    # Batch tile: multiple of 8 (f32 sublane); pad batch to a tile multiple.
    tb = min(tile_b, _round_up(B, 8))
    b_pad = _round_up(B, tb)
    if b_pad != B:
        sa = jnp.pad(sa, ((0, b_pad - B), (0, 0)))

    def resident(arr):                                  # weights/biases, VMEM-resident
        return pl.BlockSpec(arr.shape, lambda i: (0, 0))

    grid_spec = pltpu.PrefetchScalarGridSpec(
        num_scalar_prefetch=0,
        grid=(b_pad // tb,),
        in_specs=[
            pl.BlockSpec((tb, in_dim), lambda i: (i, 0)),   # batch-tiled activations
            resident(w1), resident(b1),
            resident(w_s2), resident(b_s2),
            resident(w2a), resident(w2b), resident(b2),
            resident(w3_row), resident(b3),
        ],
        out_specs=pl.BlockSpec((tb, 1), lambda i: (i, 0)),
    )

    q = pl.pallas_call(
        _critic_kernel,
        out_shape=jax.ShapeDtypeStruct((b_pad, 1), jnp.float32),
        grid_spec=grid_spec,
        compiler_params=pltpu.CompilerParams(
            dimension_semantics=("parallel",),
            vmem_limit_bytes=32 * 1024 * 1024),
    )(sa, w1, b1, w_s2, b_s2, w2a, w2b, b2, w3_row, b3)

    return q[:B]


# --------------------------- parameter construction --------------------------
def init_critic_params(key, state_dim, action_dim, init_w=0.003):
    """Logical parameters mirroring nn.Linear shapes (stored as (in, out), bias (1, out))."""
    def linear(key, fan_in, fan_out):
        k_w, k_b = jax.random.split(key)
        bound = 1.0 / jnp.sqrt(jnp.float32(fan_in))
        w = jax.random.uniform(k_w, (fan_in, fan_out), jnp.float32, -bound, bound)
        b = jax.random.uniform(k_b, (1, fan_out), jnp.float32, -bound, bound)
        return w, b

    k1, k2, k3, k4, k5 = jax.random.split(key, 5)
    w_s1, b_s1 = linear(k1, state_dim, 256)    # fcs1
    w_s2, b_s2 = linear(k2, 256, 128)          # fcs2
    w_a1, b_a1 = linear(k3, action_dim, 128)   # fca1
    w2,  b2  = linear(k4, 256, 128)            # fc2 (input = cat(s2, a1))
    w3,  b3  = linear(k5, 128, 1)              # fc3
    return (w_s1, b_s1, w_s2, b_s2, w_a1, b_a1, w2, b2, w3, b3)


def pack_critic_params(params, state_dim, action_dim):
    """One-time packing of logical params into the kernel's fused layout."""
    (w_s1, b_s1, w_s2, b_s2, w_a1, b_a1, w2, b2, w3, b3) = params
    # Block-diagonal fused first-layer weight: (state_dim+action_dim, 256+128).
    w1 = jnp.zeros((state_dim + action_dim, 384), jnp.float32)
    w1 = w1.at[:state_dim, :256].set(w_s1)
    w1 = w1.at[state_dim:, 256:].set(w_a1)
    b1 = jnp.concatenate([b_s1, b_a1], axis=1)          # (1, 384)
    # fc2 split: rows 0..127 act on s2, rows 128..255 act on a1.
    w2a = w2[:128, :]                                    # (128, 128)
    w2b = w2[128:, :]                                    # (128, 128)
    # fc3 weight as a (1, 128) row for the VPU multiply + lane reduce.
    w3_row = w3.reshape(1, 128)
    return (w1, b1, w_s2, b_s2, w2a, w2b, b2, w3_row, b3)


# ------------------------------ JAX reference ---------------------------------
def critic_reference(state, action, params):
    (w_s1, b_s1, w_s2, b_s2, w_a1, b_a1, w2, b2, w3, b3) = params
    s1 = jax.nn.relu(state @ w_s1 + b_s1)
    s2 = jax.nn.relu(s1 @ w_s2 + b_s2)
    a1 = jax.nn.relu(action @ w_a1 + b_a1)
    x = jnp.concatenate([s2, a1], axis=1)
    x = jax.nn.relu(x @ w2 + b2)
    return x @ w3 + b3


# ---------------------------------- main --------------------------------------
if __name__ == "__main__":
    key = jax.random.PRNGKey(0)
    k_param, k_state, k_action = jax.random.split(key, 3)

    batch = 8
    state_dim = 3      # Pendulum-v1 observation dim
    action_dim = 1     # Pendulum-v1 action dim

    params = init_critic_params(k_param, state_dim, action_dim)
    kernel_params = pack_critic_params(params, state_dim, action_dim)

    state = jax.random.normal(k_state, (batch, state_dim), jnp.float32)
    action = jax.random.normal(k_action, (batch, action_dim), jnp.float32)

    q = critic_forward(state, action, kernel_params)
    q = jax.block_until_ready(q)

    q_ref = critic_reference(state, action, params)
    assert q.shape == (batch, 1), q.shape
    assert jnp.allclose(q, q_ref, atol=1e-3, rtol=1e-3), (q, q_ref)

    print("KERNEL_OK")
</pallas_src>

<mosaic_0001>
module attributes {stable_mosaic.version = 11 : i64} {
  func.func @_critic_kernel(%arg0: i32, %arg1: memref<8x4xf32, #tpu.memory_space<vmem>>, %arg2: memref<4x384xf32, #tpu.memory_space<vmem>>, %arg3: memref<1x384xf32, #tpu.memory_space<vmem>>, %arg4: memref<256x128xf32, #tpu.memory_space<vmem>>, %arg5: memref<1x128xf32, #tpu.memory_space<vmem>>, %arg6: memref<128x128xf32, #tpu.memory_space<vmem>>, %arg7: memref<128x128xf32, #tpu.memory_space<vmem>>, %arg8: memref<1x128xf32, #tpu.memory_space<vmem>>, %arg9: memref<1x128xf32, #tpu.memory_space<vmem>>, %arg10: memref<1x1xf32, #tpu.memory_space<vmem>>, %arg11: memref<8x1xf32, #tpu.memory_space<vmem>>) attributes {dimension_semantics = [#tpu.dimension_semantics<parallel>], iteration_bounds = array<i64: 1>, scalar_prefetch = 0 : i64, scratch_operands = 0 : i64, tpu.core_type = #tpu.core_type<tc>, window_params = [{transform_indices = @transform_0, window_bounds = array<i64: 8, 4>}, {pipeline_mode = #tpu.pipeline_mode<synchronous>, transform_indices = @transform_1, window_bounds = array<i64: 4, 384>}, {pipeline_mode = #tpu.pipeline_mode<synchronous>, transform_indices = @transform_2, window_bounds = array<i64: 1, 384>}, {pipeline_mode = #tpu.pipeline_mode<synchronous>, transform_indices = @transform_3, window_bounds = array<i64: 256, 128>}, {pipeline_mode = #tpu.pipeline_mode<synchronous>, transform_indices = @transform_4, window_bounds = array<i64: 1, 128>}, {pipeline_mode = #tpu.pipeline_mode<synchronous>, transform_indices = @transform_5, window_bounds = array<i64: 128, 128>}, {pipeline_mode = #tpu.pipeline_mode<synchronous>, transform_indices = @transform_6, window_bounds = array<i64: 128, 128>}, {pipeline_mode = #tpu.pipeline_mode<synchronous>, transform_indices = @transform_7, window_bounds = array<i64: 1, 128>}, {pipeline_mode = #tpu.pipeline_mode<synchronous>, transform_indices = @transform_8, window_bounds = array<i64: 1, 128>}, {pipeline_mode = #tpu.pipeline_mode<synchronous>, transform_indices = @transform_9, window_bounds = array<i64: 1, 1>}, {transform_indices = @transform_10, window_bounds = array<i64: 8, 1>}]} {
    %c0 = arith.constant 0 : index
    %c0_0 = arith.constant 0 : index
    %0 = vector.load %arg1[%c0, %c0_0] : memref<8x4xf32, #tpu.memory_space<vmem>>, vector<8x4xf32>
    %c0_1 = arith.constant 0 : index
    %c0_2 = arith.constant 0 : index
    %1 = vector.load %arg2[%c0_1, %c0_2] : memref<4x384xf32, #tpu.memory_space<vmem>>, vector<4x384xf32>
    %cst = arith.constant dense<0.000000e+00> : vector<8x384xf32>
    %2 = tpu.matmul %0, %1, %cst {dimension_numbers = #tpu.dot_dimension_numbers<[1], [0], [0], [1], [0, 0, 1, 1], [], []>} : vector<8x4xf32>, vector<4x384xf32>, vector<8x384xf32> -> vector<8x384xf32>
    %c0_3 = arith.constant 0 : index
    %c0_4 = arith.constant 0 : index
    %3 = vector.load %arg3[%c0_3, %c0_4] : memref<1x384xf32, #tpu.memory_space<vmem>>, vector<1x384xf32>
    %4 = vector.broadcast %3 : vector<1x384xf32> to vector<8x384xf32>
    %5 = arith.addf %2, %4 : vector<8x384xf32>
    %cst_5 = arith.constant 0.000000e+00 : f32
    %6 = vector.broadcast %cst_5 : f32 to vector<8x384xf32>
    %7 = arith.maximumf %5, %6 : vector<8x384xf32>
    %8 = vector.extract_strided_slice %7 {offsets = [0, 0], sizes = [8, 256], strides = [1, 1]} : vector<8x384xf32> to vector<8x256xf32>
    %9 = vector.extract_strided_slice %7 {offsets = [0, 256], sizes = [8, 128], strides = [1, 1]} : vector<8x384xf32> to vector<8x128xf32>
    %c0_6 = arith.constant 0 : index
    %c0_7 = arith.constant 0 : index
    %10 = vector.load %arg4[%c0_6, %c0_7] : memref<256x128xf32, #tpu.memory_space<vmem>>, vector<256x128xf32>
    %cst_8 = arith.constant dense<0.000000e+00> : vector<8x128xf32>
    %11 = tpu.matmul %8, %10, %cst_8 {dimension_numbers = #tpu.dot_dimension_numbers<[1], [0], [0], [1], [0, 0, 1, 1], [], []>} : vector<8x256xf32>, vector<256x128xf32>, vector<8x128xf32> -> vector<8x128xf32>
    %c0_9 = arith.constant 0 : index
    %c0_10 = arith.constant 0 : index
    %12 = vector.load %arg5[%c0_9, %c0_10] : memref<1x128xf32, #tpu.memory_space<vmem>>, vector<1x128xf32>
    %13 = vector.broadcast %12 : vector<1x128xf32> to vector<8x128xf32>
    %14 = arith.addf %11, %13 : vector<8x128xf32>
    %cst_11 = arith.constant 0.000000e+00 : f32
    %15 = vector.broadcast %cst_11 : f32 to vector<8x128xf32>
    %16 = arith.maximumf %14, %15 : vector<8x128xf32>
    %c0_12 = arith.constant 0 : index
    %c0_13 = arith.constant 0 : index
    %17 = vector.load %arg6[%c0_12, %c0_13] : memref<128x128xf32, #tpu.memory_space<vmem>>, vector<128x128xf32>
    %cst_14 = arith.constant dense<0.000000e+00> : vector<8x128xf32>
    %18 = tpu.matmul %16, %17, %cst_14 {dimension_numbers = #tpu.dot_dimension_numbers<[1], [0], [0], [1], [0, 0, 1, 1], [], []>} : vector<8x128xf32>, vector<128x128xf32>, vector<8x128xf32> -> vector<8x128xf32>
    %c0_15 = arith.constant 0 : index
    %c0_16 = arith.constant 0 : index
    %19 = vector.load %arg7[%c0_15, %c0_16] : memref<128x128xf32, #tpu.memory_space<vmem>>, vector<128x128xf32>
    %cst_17 = arith.constant dense<0.000000e+00> : vector<8x128xf32>
    %20 = tpu.matmul %9, %19, %cst_17 {dimension_numbers = #tpu.dot_dimension_numbers<[1], [0], [0], [1], [0, 0, 1, 1], [], []>} : vector<8x128xf32>, vector<128x128xf32>, vector<8x128xf32> -> vector<8x128xf32>
    %21 = arith.addf %18, %20 : vector<8x128xf32>
    %c0_18 = arith.constant 0 : index
    %c0_19 = arith.constant 0 : index
    %22 = vector.load %arg8[%c0_18, %c0_19] : memref<1x128xf32, #tpu.memory_space<vmem>>, vector<1x128xf32>
    %23 = vector.broadcast %22 : vector<1x128xf32> to vector<8x128xf32>
    %24 = arith.addf %21, %23 : vector<8x128xf32>
    %cst_20 = arith.constant 0.000000e+00 : f32
    %25 = vector.broadcast %cst_20 : f32 to vector<8x128xf32>
    %26 = arith.maximumf %24, %25 : vector<8x128xf32>
    %c0_21 = arith.constant 0 : index
    %c0_22 = arith.constant 0 : index
    %27 = vector.load %arg9[%c0_21, %c0_22] : memref<1x128xf32, #tpu.memory_space<vmem>>, vector<1x128xf32>
    %28 = vector.broadcast %27 : vector<1x128xf32> to vector<8x128xf32>
    %29 = arith.mulf %26, %28 : vector<8x128xf32>
    %cst_23 = arith.constant dense<0.000000e+00> : vector<8xf32>
    %30 = vector.multi_reduction <add>, %29, %cst_23 [1] : vector<8x128xf32> to vector<8xf32>
    %31 = vector.shape_cast %30 : vector<8xf32> to vector<8x1xf32>
    %c0_24 = arith.constant 0 : index
    %c0_25 = arith.constant 0 : index
    %32 = vector.load %arg10[%c0_24, %c0_25] : memref<1x1xf32, #tpu.memory_space<vmem>>, vector<1x1xf32>
    %33 = vector.broadcast %32 : vector<1x1xf32> to vector<8x1xf32>
    %34 = arith.addf %31, %33 : vector<8x1xf32>
    %c0_26 = arith.constant 0 : index
    %c0_27 = arith.constant 0 : index
    %35 = vector.load %arg11[%c0_26, %c0_27] : memref<8x1xf32, #tpu.memory_space<vmem>>, vector<8x1xf32>
    tpu.vector_store %arg11[%c0_26, %c0_27], %34 {strides = array<i32>} : memref<8x1xf32, #tpu.memory_space<vmem>>, vector<8x1xf32>,
    return
  }
  func.func @transform_0(%arg0: i32) -> (i32, i32) {
    %c0_i32 = arith.constant 0 : i32
    %c0_i32_0 = arith.constant 0 : i32
    return %arg0, %c0_i32 : i32, i32
  }
  func.func @transform_1(%arg0: i32) -> (i32, i32) {
    %c0_i32 = arith.constant 0 : i32
    %c0_i32_0 = arith.constant 0 : i32
    %c0_i32_1 = arith.constant 0 : i32
    return %c0_i32, %c0_i32_0 : i32, i32
  }
  func.func @transform_2(%arg0: i32) -> (i32, i32) {
    %c0_i32 = arith.constant 0 : i32
    %c0_i32_0 = arith.constant 0 : i32
    %c0_i32_1 = arith.constant 0 : i32
    return %c0_i32, %c0_i32_0 : i32, i32
  }
  func.func @transform_3(%arg0: i32) -> (i32, i32) {
    %c0_i32 = arith.constant 0 : i32
    %c0_i32_0 = arith.constant 0 : i32
    %c0_i32_1 = arith.constant 0 : i32
    return %c0_i32, %c0_i32_0 : i32, i32
  }
  func.func @transform_4(%arg0: i32) -> (i32, i32) {
    %c0_i32 = arith.constant 0 : i32
    %c0_i32_0 = arith.constant 0 : i32
    %c0_i32_1 = arith.constant 0 : i32
    return %c0_i32, %c0_i32_0 : i32, i32
  }
  func.func @transform_5(%arg0: i32) -> (i32, i32) {
    %c0_i32 = arith.constant 0 : i32
    %c0_i32_0 = arith.constant 0 : i32
    %c0_i32_1 = arith.constant 0 : i32
    return %c0_i32, %c0_i32_0 : i32, i32
  }
  func.func @transform_6(%arg0: i32) -> (i32, i32) {
    %c0_i32 = arith.constant 0 : i32
    %c0_i32_0 = arith.constant 0 : i32
    %c0_i32_1 = arith.constant 0 : i32
    return %c0_i32, %c0_i32_0 : i32, i32
  }
  func.func @transform_7(%arg0: i32) -> (i32, i32) {
    %c0_i32 = arith.constant 0 : i32
    %c0_i32_0 = arith.constant 0 : i32
    %c0_i32_1 = arith.constant 0 : i32
    return %c0_i32, %c0_i32_0 : i32, i32
  }
  func.func @transform_8(%arg0: i32) -> (i32, i32) {
    %c0_i32 = arith.constant 0 : i32
    %c0_i32_0 = arith.constant 0 : i32
    %c0_i32_1 = arith.constant 0 : i32
    return %c0_i32, %c0_i32_0 : i32, i32
  }
  func.func @transform_9(%arg0: i32) -> (i32, i32) {
    %c0_i32 = arith.constant 0 : i32
    %c0_i32_0 = arith.constant 0 : i32
    %c0_i32_1 = arith.constant 0 : i32
    return %c0_i32, %c0_i32_0 : i32, i32
  }
  func.func @transform_10(%arg0: i32) -> (i32, i32) {
    %c0_i32 = arith.constant 0 : i32
    %c0_i32_0 = arith.constant 0 : i32
    return %arg0, %c0_i32 : i32, i32
  }
}

</mosaic_0001>

<bundles_post_ra>
// kernel: tpu_custom_call.1
= control target key start
LH: loop header
LB: loop body
LE: loop exit
PB: predicated region body
PF: predicated region fallthrough
CT: control target
= control target key end

     0   :  { %s1062_s0 = inlined_call_operand.vmem [shape: f32[8,4], index: 0, kind: input, shape index: {}]   ;;  %s1063_s1 = inlined_call_operand.vmem [shape: f32[4,384], index: 1, kind: input, shape index: {}]   ;;  %s1064_s2 = inlined_call_operand.vmem [shape: f32[1,384], index: 2, kind: input, shape index: {}]   ;;  %s1065_s3 = inlined_call_operand.hbm [shape: f32[256,128], index: 3, kind: input, shape index: {}]   ;;  %s1066_s4 = inlined_call_operand.vmem [shape: f32[1,128], index: 4, kind: input, shape index: {}]   ;;  %s1067_s5 = inlined_call_operand.hbm [shape: f32[128,128], index: 5, kind: input, shape index: {}]   ;;  %s1068_s6 = inlined_call_operand.hbm [shape: f32[128,128], index: 6, kind: input, shape index: {}]   ;;  %s1069_s7 = inlined_call_operand.vmem [shape: f32[1,128], index: 7, kind: input, shape index: {}]   ;;  %s1070_s8 = inlined_call_operand.vmem [shape: f32[1,128], index: 8, kind: input, shape index: {}]   ;;  %s1071_s9 = inlined_call_operand.<no memory space> [shape: f32[1,1], index: 9, kind: input, shape index: {}]   ;;  %s1072_s10 = inlined_call_operand.vmem [shape: f32[8,1], index: 10, kind: output, shape index: {}]  }
   0x1   :  { %v15_v0 = vstv %s1071_s9 }
   0x2   :  { %16 = vst [vmem:[#allocation2] sm:$0x1] %v15_v0 }
   0x3   :  { %17 = vsyncpa [#allocation4], 0 }
   0x4   :  { %18 = vsyncpa [#allocation6], 0  ;;  %s887_s15 = smov [#allocation5]   ;;  %s888_s17 = smov [#allocation3]  }
   0x5   :  { %s44_s16 = sshll.u32 %s887_s15, 4  ;;  %s30_s18 = sshll.u32 %s888_s17, 4  ;;  %s45_s16 = int_to_ptr.vmem [resolvable:$true] %s44_s16  ;;  %s953_s18 = int_to_ptr.vmem [resolvable:$true] %s30_s18 }
   0x6   :  { %s817_s21 = scalar_lea.hbm %s1067_s5, 2048 }
   0x7   :  { %p818_p0 = scmp.ne.s32.totalorder %s1067_s5, %s817_s21  ;;  %p821_p1 = scmp.lt.u32.totalorder %s817_s21, %s1067_s5 }
   0x9   :  { %p823_p2 = pnand %p821_p1, %p818_p0 }
   0xb   :  { %826 = shalt.err (!%p823_p2)
}
   0xc   :  { %s827_s25 = scalar_lea.vmem %s45_s16, 2048  ;;  %p832_p4 = scmp.lt.s32.totalorder %s45_s16, %s45_s16 }
   0xd   :  { %p828_p3 = scmp.ne.s32.totalorder %s45_s16, %s827_s25  ;;  %p833_p5 = scmp.lt.s32.totalorder %s827_s25, %s827_s25 }
   0xf   :  { %p834_p6 = por %p833_p5, %p832_p4 }
  0x11   :  { %p835_p7 = pnand %p834_p6, %p828_p3 }
  0x13   :  { %838 = shalt.err (!%p835_p7)
}
  0x14   :  { %s889_s26 = smov 128   ;;  %s890_s27 = smov 8  }
  0x15   :  { %50 = dma.hbm_to_vmem [thread:$0]  %s1067_s5, 2048, %s45_s16, [#allocation6], %s889_s26, %s889_s26, %s890_s27  }
  0x16   :  { %s839_s12 = scalar_lea.hbm %s1065_s3, 4096 }
  0x17   :  { %p840_p8 = scmp.ne.s32.totalorder %s1065_s3, %s839_s12  ;;  %p843_p9 = scmp.lt.u32.totalorder %s839_s12, %s1065_s3 }
  0x19   :  { %p845_p10 = pnand %p843_p9, %p840_p8 }
  0x1b   :  { %848 = shalt.err (!%p845_p10)
}
  0x1c   :  { %s849_s19 = scalar_lea.vmem %s953_s18, 4096  ;;  %p854_p12 = scmp.lt.s32.totalorder %s953_s18, %s953_s18 }
  0x1d   :  { %p850_p11 = scmp.ne.s32.totalorder %s953_s18, %s849_s19  ;;  %p855_p13 = scmp.lt.s32.totalorder %s849_s19, %s849_s19 }
  0x1f   :  { %p856_p0 = por %p855_p13, %p854_p12 }
  0x21   :  { %p857_p1 = pnand %p856_p0, %p850_p11 }
  0x23   :  { %860 = shalt.err (!%p857_p1)
}
  0x24   :  { %36 = dma.hbm_to_vmem [thread:$0]  %s1065_s3, 4096, %s953_s18, [#allocation4], %s889_s26, %s889_s26, %s890_s27  }
  0x25   :  { %s891_s20 = smov [#allocation7]   ;;  %s861_s24 = scalar_lea.hbm %s1068_s6, 2048 }
  0x26   :  { %s56_s21 = sshll.u32 %s891_s20, 4  ;;  %p862_p2 = scmp.ne.s32.totalorder %s1068_s6, %s861_s24  ;;  %s57_s21 = int_to_ptr.vmem [resolvable:$true] %s56_s21 }
  0x27   :  { %p865_p3 = scmp.lt.u32.totalorder %s861_s24, %s1068_s6 }
  0x29   :  { %p867_p4 = pnand %p865_p3, %p862_p2 }
  0x2b   :  { %870 = shalt.err (!%p867_p4)
}
  0x2c   :  { %s871_s30 = scalar_lea.vmem %s57_s21, 2048  ;;  %p876_p6 = scmp.lt.s32.totalorder %s57_s21, %s57_s21 }
  0x2d   :  { %p872_p5 = scmp.ne.s32.totalorder %s57_s21, %s871_s30  ;;  %p877_p7 = scmp.lt.s32.totalorder %s871_s30, %s871_s30 }
  0x2f   :  { %p878_p8 = por %p877_p7, %p876_p6 }
  0x31   :  { %p879_p9 = pnand %p878_p8, %p872_p5 }
  0x33   :  { %882 = shalt.err (!%p879_p9)
}
  0x34   :  { %62 = dma.hbm_to_vmem [thread:$0]  %s1068_s6, 2048, %s57_s21, [#allocation6], %s889_s26, %s889_s26, %s890_s27  }
  0x35   :  { %883 = dma.done.wait [#allocation4], 4096  }
  0x36   :  { %884 = vsyncadd [#allocation4], 4294963200 }
  0x37   :  { %885 = dma.done.wait [#allocation6], 4096  }
  0x38   :  { %886 = vsyncadd [#allocation6], 4294963200  ;;  %v892_v1 = vmov 0.0   ;;  %v79_v2 = vld [vmem:[%s1063_s1] sm:$0xff]  ;;  %vm105_vm0 = vcmask 1043456   ;;  %v273_v6 = vld [vmem:[#allocation3 + $0x88] sm:$0xff] }
  0x39   :  { %176 = vmatprep.mubr.f32.mxu1 %v892_v1  ;;  %v1012_v3 = vld [vmem:[%s1062_s0] sm:$0xff]  ;;  %v100_v5 = vcombine.high %v79_v2, %v79_v2  ;;  %v257_v8 = vld [vmem:[#allocation3 + $0x8] sm:$0xff]  ;;  %vm101_vm1 = vcmask 31744   ;;  %v274_v11 = vld [vmem:[#allocation3 + $0x90] sm:$0xff]  ;;  %vm893_vm2 = vmmov 0   ;;  %v894_v56 = vmov 0.0|0.0  }
  0x3a   :  { %v272_v4 = vld [vmem:[#allocation3 + $0x80] sm:$0xff]  ;;  %v275_v12 = vld [vmem:[#allocation3 + $0x98] sm:$0xff]  ;;  %v258_v13 = vld [vmem:[#allocation3 + $0x10] sm:$0xff]  ;;  %vm565_vm3 = vcmask 7168  }
  0x3b   :  { %v256_v7 = vld [vmem:[#allocation3] sm:$0xff]  ;;  %v728_v9 = vpack.c.bf16 %v273_v6, %v272_v4  ;;  %573 = vmatprep.subr.msk.mxu1 %vm105_vm0, %v100_v5  ;;  %v732_v14 = vpack.c.bf16 %v275_v12, %v274_v11  ;;  %v259_v15 = vld [vmem:[#allocation3 + $0x18] sm:$0xff]  ;;  %v277_v17 = vld [vmem:[#allocation3 + $0xa8] sm:$0xff] }
  0x3c   :  { %v730_v10 = vpack.c.bf16 %v257_v8, %v256_v7  ;;  %v276_v16 = vld [vmem:[#allocation3 + $0xa0] sm:$0xff]  ;;  %574 = vmatpush1.msk.msra.mxu1 %vm105_vm0, %v79_v2  ;;  %v734_v18 = vpack.c.bf16 %v259_v15, %v258_v13  ;;  %v261_v21 = vld [vmem:[#allocation3 + $0x28] sm:$0xff]  ;;  %v278_v22 = vld [vmem:[#allocation3 + $0xb0] sm:$0xff] }
  0x3d   :  { %729 = vmatprep.subr.bf16.mxu0 %v728_v9  ;;  %575 = vmatmul.mubr.msk.f32.vlgmr.msra.gmra.mrb[0].mxu1 %vm101_vm1, %v1012_v3  ;;  %v736_v19 = vpack.c.bf16 %v277_v17, %v276_v16  ;;  %v260_v20 = vld [vmem:[#allocation3 + $0x20] sm:$0xff]  ;;  %v279_v23 = vld [vmem:[#allocation3 + $0xb8] sm:$0xff]  ;;  %v262_v26 = vld [vmem:[#allocation3 + $0x30] sm:$0xff] }
  0x3e   :  { %731 = vmatpush3.bf16.msra.mxu0 %v730_v10  ;;  %653 = vmatprep.subr.mxu1 %v892_v1  ;;  %v738_v24 = vpack.c.bf16 %v261_v21, %v260_v20  ;;  %v740_v25 = vpack.c.bf16 %v279_v23, %v278_v22  ;;  %v263_v27 = vld [vmem:[#allocation3 + $0x38] sm:$0xff]  ;;  %v280_v28 = vld [vmem:[#allocation3 + $0xc0] sm:$0xff]  ;;  %v281_v29 = vld [vmem:[#allocation3 + $0xc8] sm:$0xff]  ;;  %v83_v10 = vlaneseq }
  0x3f   :  { %733 = vmatprep.subr.bf16.mxu0 %v732_v14  ;;  %v742_v30 = vpack.c.bf16 %v263_v27, %v262_v26  ;;  %v744_v31 = vpack.c.bf16 %v281_v29, %v280_v28  ;;  %v264_v32 = vld [vmem:[#allocation3 + $0x40] sm:$0xff]  ;;  %v265_v33 = vld [vmem:[#allocation3 + $0x48] sm:$0xff]  ;;  %v282_v34 = vld [vmem:[#allocation3 + $0xd0] sm:$0xff]  ;;  %655 = vmatprep.mubr.msk.f32.mxu1 %vm893_vm2, %v892_v1 }
  0x40   :  { %v283_v35 = vld [vmem:[#allocation3 + $0xd8] sm:$0xff]  ;;  %v746_v36 = vpack.c.bf16 %v265_v33, %v264_v32  ;;  %v266_v38 = vld [vmem:[#allocation3 + $0x50] sm:$0xff]  ;;  %v284_v40 = vld [vmem:[#allocation3 + $0xe0] sm:$0xff]  ;;  %v84_v11 = vshrl.u32 %v83_v10, 7 }
  0x41   :  { %v748_v37 = vpack.c.bf16 %v283_v35, %v282_v34  ;;  %v267_v39 = vld [vmem:[#allocation3 + $0x58] sm:$0xff]  ;;  %v285_v41 = vld [vmem:[#allocation3 + $0xe8] sm:$0xff]  ;;  %v268_v44 = vld [vmem:[#allocation3 + $0x60] sm:$0xff] }
  0x42   :  { %735 = vmatpush3.bf16.msra.mxu0 %v734_v18  ;;  %v750_v42 = vpack.c.bf16 %v267_v39, %v266_v38  ;;  %v752_v43 = vpack.c.bf16 %v285_v41, %v284_v40  ;;  %v269_v45 = vld [vmem:[#allocation3 + $0x68] sm:$0xff]  ;;  %v286_v47 = vld [vmem:[#allocation3 + $0xf0] sm:$0xff]  ;;  %v287_v48 = vld [vmem:[#allocation3 + $0xf8] sm:$0xff]  ;;  %v85_v12 = vsub.s32 0, %v84_v11  ;;  %v89_v14 = vsub.s32 1, %v84_v11 }
  0x43   :  { %737 = vmatprep.subr.bf16.mxu0 %v736_v19  ;;  %v754_v46 = vpack.c.bf16 %v269_v45, %v268_v44  ;;  %v756_v49 = vpack.c.bf16 %v287_v48, %v286_v47  ;;  %v270_v50 = vld [vmem:[#allocation3 + $0x70] sm:$0xff]  ;;  %v271_v51 = vld [vmem:[#allocation3 + $0x78] sm:$0xff]  ;;  %v80_v53 = vld [vmem:[%s1063_s1 + $0x8] sm:$0xf] }
  0x44   :  { %v758_v52 = vpack.c.bf16 %v271_v51, %v270_v50  ;;  %654 = vmatpush3.msk.msra.mxu1 %vm105_vm0, %v80_v53  ;;  %v382_v54 = vld [vmem:[#allocation7] sm:$0xff]  ;;  %v383_v55 = vld [vmem:[#allocation7 + $0x8] sm:$0xff]  ;;  %v384_v58 = vld [vmem:[#allocation7 + $0x10] sm:$0xff] }
  0x45   :  { %760 = vmatprep.subr.bf16.mxu1 %v894_v56  ;;  %v761_v57 = vpack.c.bf16 %v383_v55, %v382_v54  ;;  %v385_v59 = vld [vmem:[#allocation7 + $0x18] sm:$0xff]  ;;  %656 = vmatmul.mubr.msk.f32.vlgmr.msra.gmra.mrb[2].mxu1 %vm101_vm1, %v1012_v3  ;;  %v386_v61 = vld [vmem:[#allocation7 + $0x20] sm:$0xff]  ;;  %v387_v62 = vld [vmem:[#allocation7 + $0x28] sm:$0xff] }
  0x46   :  { %739 = vmatpush3.bf16.msra.mxu0 %v738_v24  ;;  %v764_v60 = vpack.c.bf16 %v385_v59, %v384_v58  ;;  %690 = vmatprep.mubr.msk.f32.mxu1 %vm893_vm2, %v892_v1  ;;  %v767_v63 = vpack.c.bf16 %v387_v62, %v386_v61  ;;  %v388_v0 = vld [vmem:[#allocation7 + $0x30] sm:$0xff]  ;;  %v389_v2 = vld [vmem:[#allocation7 + $0x38] sm:$0xff]  ;;  %v390_v3 = vld [vmem:[#allocation7 + $0x40] sm:$0xff] }
  0x47   :  { %741 = vmatprep.subr.bf16.mxu0 %v740_v25  ;;  %762 = vmatpush3.bf16.msra.mxu1 %v761_v57  ;;  %v770_v4 = vpack.c.bf16 %v389_v2, %v388_v0  ;;  %v391_v5 = vld [vmem:[#allocation7 + $0x48] sm:$0xff]  ;;  %v392_v7 = vld [vmem:[#allocation7 + $0x50] sm:$0xff]  ;;  %v393_v8 = vld [vmem:[#allocation7 + $0x58] sm:$0xff] }
  0x48   :  { %763 = vmatprep.subr.bf16.mxu1 %v894_v56  ;;  %v773_v6 = vpack.c.bf16 %v391_v5, %v390_v3  ;;  %v776_v9 = vpack.c.bf16 %v393_v8, %v392_v7  ;;  %v81_v13 = vld [vmem:[%s1064_s2] sm:$0x7]  ;;  %v367_v21 = vld [vmem:[#allocation5 + $0x8] sm:$0xff]  ;;  %v368_v26 = vld [vmem:[#allocation5 + $0x10] sm:$0xff] }
  0x49   :  { %v86_v15 = vrot.slane %v81_v13, %v85_v12  ;;  %v90_v16 = vrot.slane %v81_v13, %v89_v14  ;;  %v366_v20 = vld [vmem:[#allocation5] sm:$0xff]  ;;  %v369_v27 = vld [vmem:[#allocation5 + $0x18] sm:$0xff]  ;;  %v372_v32 = vld [vmem:[#allocation5 + $0x30] sm:$0xff] }
  0x4a   :  { %743 = vmatpush3.bf16.msra.mxu0 %v742_v30  ;;  %v785_v24 = vpack.c.bf16 %v367_v21, %v366_v20  ;;  %v788_v28 = vpack.c.bf16 %v369_v27, %v368_v26  ;;  %v370_v29 = vld [vmem:[#allocation5 + $0x20] sm:$0xff]  ;;  %v371_v30 = vld [vmem:[#allocation5 + $0x28] sm:$0xff]  ;;  %v373_v33 = vld [vmem:[#allocation5 + $0x38] sm:$0xff] }
  0x4b   :  { %745 = vmatprep.subr.bf16.mxu0 %v744_v31  ;;  %765 = vmatpush3.bf16.msra.mxu1 %v764_v60  ;;  %v791_v31 = vpack.c.bf16 %v371_v30, %v370_v29  ;;  %v794_v34 = vpack.c.bf16 %v373_v33, %v372_v32  ;;  %v374_v35 = vld [vmem:[#allocation5 + $0x40] sm:$0xff]  ;;  %v377_v38 = vld [vmem:[#allocation5 + $0x58] sm:$0xff]  ;;  %v395_v41 = vld [vmem:[#allocation7 + $0x68] sm:$0xff] }
  0x4c   :  { %766 = vmatprep.subr.bf16.mxu1 %v894_v56  ;;  %v394_v40 = vld [vmem:[#allocation7 + $0x60] sm:$0xff]  ;;  %v379_v44 = vld [vmem:[#allocation5 + $0x68] sm:$0xff]  ;;  %v396_v48 = vld [vmem:[#allocation7 + $0x70] sm:$0xff] }
  0x4d   :  { %v381_v53 = vld [vmem:[#allocation5 + $0x78] sm:$0xff] }
  0x4e   :  { %747 = vmatpush3.bf16.msra.mxu0 %v746_v36  ;;  %v375_v36 = vld [vmem:[#allocation5 + $0x48] sm:$0xff]  ;;  %v578_v60 = vld [vmem:[%s1066_s4] ss:$0 sm:$0xff] }
  0x4f   :  { %749 = vmatprep.subr.bf16.mxu0 %v748_v37  ;;  %768 = vmatpush3.bf16.msra.mxu1 %v767_v63  ;;  %v797_v37 = vpack.c.bf16 %v375_v36, %v374_v35  ;;  %v579_v3 = vld [vmem:[%s1069_s7] ss:$0 sm:$0xff] }
  0x50   :  { %769 = vmatprep.subr.bf16.mxu1 %v894_v56  ;;  %v580_v8 = vld [vmem:[%s1070_s8] ss:$0 sm:$0xff] }
  0x52   :  { %751 = vmatpush3.bf16.msra.mxu0 %v750_v42  ;;  %v779_v42 = vpack.c.bf16 %v395_v41, %v394_v40 }
  0x53   :  { %753 = vmatprep.subr.bf16.mxu0 %v752_v43  ;;  %771 = vmatpush3.bf16.msra.mxu1 %v770_v4  ;;  %v378_v43 = vld [vmem:[#allocation5 + $0x60] sm:$0xff] }
  0x54   :  { %772 = vmatprep.subr.bf16.mxu1 %v894_v56  ;;  %v803_v45 = vpack.c.bf16 %v379_v44, %v378_v43 }
  0x56   :  { %755 = vmatpush3.bf16.msra.mxu0 %v754_v46  ;;  %v93_v46 = vsub.s32 2, %v84_v11  ;;  %v581_v11 = vld [vmem:[#allocation2] ss:$0 sm:$0xff] }
  0x57   :  { %757 = vmatprep.subr.bf16.mxu0 %v756_v49  ;;  %774 = vmatpush3.bf16.msra.mxu1 %v773_v6  ;;  %v397_v49 = vld [vmem:[#allocation7 + $0x78] sm:$0xff] }
  0x58   :  { %775 = vmatprep.subr.bf16.mxu1 %v894_v56  ;;  %v94_v47 = vrot.slane %v81_v13, %v93_v46  ;;  %v782_v51 = vpack.c.bf16 %v397_v49, %v396_v48 }
  0x5a   :  { %759 = vmatpush3.bf16.msra.mxu0 %v758_v52  ;;  %v380_v52 = vld [vmem:[#allocation5 + $0x70] sm:$0xff] }
  0x5b   :  { %784 = vmatprep.subr.bf16.mxu0 %v894_v56  ;;  %777 = vmatpush3.bf16.msra.mxu1 %v776_v9  ;;  %v806_v57 = vpack.c.bf16 %v381_v53, %v380_v52 }
  0x5c   :  { %778 = vmatprep.subr.bf16.mxu1 %v894_v56 }
  0x5f   :  { %780 = vmatpush3.bf16.msra.mxu1 %v779_v42 }
  0x60   :  { %781 = vmatprep.subr.bf16.mxu1 %v894_v56 }
  0x63   :  { %783 = vmatpush3.bf16.msra.mxu1 %v782_v51 }
 0x110   :  { %v178_v17 = vpop.f32.mrb[0].mxu1 }
 0x111   :  { %v179_v18 = vadd.f32 %v178_v17, %v86_v15  ;;  %v180_v19 = vpop.f32.mrb[1].mxu1 }
 0x112   :  { %v181_v22 = vadd.f32 %v180_v19, %v90_v16 }
 0x113   :  { %v253_v25 = vmax.f32 %v179_v18, 0.0 }
 0x114   :  { %v254_v23 = vmax.f32 %v181_v22, 0.0 }
 0x116   :  { %359 = vmatprep.mubr.f32.mxu0 %v254_v23 }
 0x117   :  { %360 = vmatmul.mubr.f32.vlgmr.msra.gmra.mrb[0].mxu0 %v253_v25 }
 0x118   :  { %786 = vmatpush3.bf16.msra.mxu0 %v785_v24  ;;  %725 = vmatprep.mubr.msk.f32.mxu0 %vm893_vm2, %v892_v1  ;;  %v376_v1 = vld [vmem:[#allocation5 + $0x50] sm:$0xff]  ;;  %v249_v50 = vpop.f32.mrb[2].mxu1 }
 0x119   :  { %787 = vmatprep.subr.bf16.mxu0 %v894_v56  ;;  %v800_v39 = vpack.c.bf16 %v377_v38, %v376_v1  ;;  %v250_v54 = vadd.f32 %v249_v50, %v94_v47  ;;  %v657_v55 = vpop.f32.mrb[3].mxu1 }
 0x11b   :  { %v255_v58 = vmax.f32 %v250_v54, 0.0 }
 0x11c   :  { %789 = vmatpush3.bf16.msra.mxu0 %v788_v28 }
 0x11d   :  { %790 = vmatprep.subr.bf16.mxu0 %v894_v56  ;;  %691 = vmatmul.mubr.f32.vlgmr.msra.gmra.mrb[4].mxu1 %v255_v58 }
 0x120   :  { %792 = vmatpush3.bf16.msra.mxu0 %v791_v31 }
 0x121   :  { %793 = vmatprep.subr.bf16.mxu0 %v894_v56 }
 0x124   :  { %795 = vmatpush3.bf16.msra.mxu0 %v794_v34 }
 0x125   :  { %796 = vmatprep.subr.bf16.mxu0 %v894_v56 }
 0x128   :  { %798 = vmatpush3.bf16.msra.mxu0 %v797_v37 }
 0x129   :  { %799 = vmatprep.subr.bf16.mxu0 %v894_v56 }
 0x12c   :  { %801 = vmatpush3.bf16.msra.mxu0 %v800_v39 }
 0x12d   :  { %802 = vmatprep.subr.bf16.mxu0 %v894_v56 }
 0x130   :  { %804 = vmatpush3.bf16.msra.mxu0 %v803_v45 }
 0x131   :  { %805 = vmatprep.subr.bf16.mxu0 %v894_v56 }
 0x134   :  { %807 = vmatpush3.bf16.msra.mxu0 %v806_v57 }
 0x1ea   :  { %v616_v59 = vpop.f32.mrb[0].mxu0 }
 0x1eb   :  { %v617_v61 = vpop.f32.mrb[1].mxu0 }
 0x1ec   :  { %v618_v62 = vadd.f32 %v617_v61, %v616_v59 }
 0x1ee   :  { %v362_v63 = vadd.f32 %v618_v62, %v578_v60 }
 0x1f0   :  { %v365_v0 = vmax.f32 %v362_v63, 0.0  ;;  %v464_v56 = vpop.f32.mrb[4].mxu1 }
 0x1f1   :  { %v692_v2 = vpop.f32.mrb[5].mxu1 }
 0x1f2   :  { %726 = vmatmul.mubr.f32.vlgmr.msra.gmra.mrb[2].mxu0 %v365_v0 }
 0x2c5   :  { %v534_v4 = vpop.f32.mrb[2].mxu0 }
 0x2c6   :  { %v535_v5 = vadd.f32 %v534_v4, %v464_v56  ;;  %v727_v6 = vpop.f32.mrb[3].mxu0 }
 0x2c8   :  { %v545_v7 = vadd.f32 %v579_v3, %v535_v5 }
 0x2ca   :  { %v546_v9 = vmax.f32 %v545_v7, 0.0 }
 0x2cc   :  { %v554_v10 = vmul.f32 %v580_v8, %v546_v9 }
 0x2ce   :  { %555 = vadd.xlane.f32.xlu0 %v554_v10 }
 0x35b   :  { %v556_v12 = vpop.xlane.xlu0 %555 }
 0x35c   :  { %v564_v13 = vadd.f32 %v581_v11, %v556_v12 }
 0x35e   :  { %566 = vst.msk [vmem:[%s1072_s10] sm:$0xff] %vm565_vm3, %v564_v13 }
 0x35f   :  { %571 = vsyncpa [#allocation4], 1 }
 0x360   :  { %572 = vsyncpa [#allocation6], 1 }

</bundles_post_ra>
